<compile_context>
chip_gen: v7x
topology: tpu7x:2x2x1
jax: 0.10.0
libtpu: 0.0.40
codegen_flags: <defaults>
</compile_context>

<pallas_src>
import jax
import jax.numpy as jnp
from jax.experimental import pallas as pl
from jax.experimental.pallas import tpu as pltpu


def _round_up(x, m):
    return ((x + m - 1) // m) * m


def _h_chunk(H):
    # Bound the live f32 upcast / product intermediates to ~512 lanes per pass.
    return H if H <= 512 else 512


def _vmem_capacity_bytes():
    try:
        return int(pltpu.get_tpu_info().vmem_capacity_bytes)
    except Exception:
        # conservative fallback = v7x per-TensorCore VMEM
        return 64 * 1024 * 1024


def _plan_batch_tiling(B, S, H, in_itemsize, out_itemsize):
    """Pick (tb, B_pad, vmem_limit_bytes).

    tb is either B (whole contiguous slab) or a sublane-aligned tile that keeps
    each per-sequence-row DMA chunk >= ~4 KiB and fits a generation-aware VMEM
    budget."""
    vmem_phys = _vmem_capacity_bytes()
    vmem_limit = max(int(vmem_phys * 0.75), 32 * 1024 * 1024)   # ~96 MiB v5e/v6e, ~48 MiB v7x
    budget = int(vmem_limit * 0.85)
    multi_tc = vmem_phys < 100 * 1024 * 1024                    # v7x heuristic (64 MiB/TC)

    # sublane alignment for the second-to-last block dim
    sub = max(8, 32 // max(in_itemsize, 1))                     # 8 f32, 16 bf16, 32 int8
    chunk = _h_chunk(H)

    def need(tb, b_pad):
        return (2 * S * tb * H * in_itemsize        # encoder tile, double-buffered
                + 2 * b_pad * H * in_itemsize       # resident hidden (2 buffers)
                + 2 * tb * S * out_itemsize         # output tile, double-buffered
                + 2 * S * tb * chunk * 4            # f32 chunk upcast + product
                + 6 * S * tb * 4)                   # scores + softmax temporaries

    whole_fits = need(B, B) <= budget

    # Largest aligned tile that leaves >= 2 grid steps, keeps per-s DMA chunks
    # >= ~4 KiB, and fits the budget.
    split_tb = 0
    cand = sub
    while cand * 2 <= _round_up(B, sub):
        if cand * H * in_itemsize >= 4096 and need(cand, _round_up(B, cand)) <= budget:
            split_tb = cand
        cand += sub

    if whole_fits and not (multi_tc and split_tb):
        # single-TC chip (or no legal split): one fully contiguous block DMA
        return B, B, vmem_limit
    if split_tb:
        # multi-TC chip with a contiguity-safe split, or slab too big for VMEM
        return split_tb, _round_up(B, split_tb), vmem_limit
    if whole_fits:
        # multi-TC chip but B too small to split without wrecking DMA chunks.
        # TODO(synk): feed the second v7x TensorCore by splitting over S
        # (flash-style online-softmax) or H (partial-score accumulator) instead
        # of shrinking the batch tile.
        return B, B, vmem_limit
    # TODO(synk): for sequences so long that even one aligned batch tile exceeds
    # VMEM, add an S grid axis with an online-softmax accumulator; below is a
    # legal (aligned) but possibly over-budget fallback.
    tb = sub if B > sub else B
    return tb, _round_up(B, tb), vmem_limit


def _make_attn_dot_kernel(tb, H, h_chunk, single_step):
    def kernel(h_ref, e_ref, o_ref):
        # h_ref: (1, B_pad, H) resident hidden slab
        # e_ref: (S, tb, H)    encoder outputs for this batch tile (native layout)
        # o_ref: (tb, S)       lane-dense attention weights for this batch tile
        S = e_ref.shape[0]

        if single_step:
            h = h_ref[...]                                     # (1, tb, H)
        else:
            b0 = pl.multiple_of(pl.program_id(0) * tb, tb)     # tb % 8 == 0 here
            h = h_ref[:, pl.ds(b0, tb), :]                     # (1, tb, H)

        # dot score: multiply-reduce over H, chunked so the live f32
        # intermediates stay bounded; accumulate in f32.
        acc = jnp.zeros((S, tb), jnp.float32)
        for start in range(0, H, h_chunk):
            stop = min(start + h_chunk, H)
            hc = h[:, :, start:stop].astype(jnp.float32)       # (1, tb, c)
            ec = e_ref[:, :, start:stop].astype(jnp.float32)   # (S, tb, c)
            acc = acc + jnp.sum(hc * ec, axis=-1)              # (S, tb)

        # tiny (S, tb) -> (tb, S) transpose on the XLU so the softmax reduces
        # over lanes and the store is lane-dense
        scores = acc.T                                         # (tb, S)

        # numerically stable softmax over the sequence axis, exact normalization
        m = jnp.max(scores, axis=-1, keepdims=True)            # (tb, 1)
        p = jnp.exp(scores - m)                                # (tb, S)
        denom = jnp.sum(p, axis=-1, keepdims=True)             # (tb, 1)
        o_ref[...] = (p / denom).astype(o_ref.dtype)

    return kernel


def attn_dot(hidden, encoder_outputs):
    """hidden: (1, B, H), encoder_outputs: (S, B, H)  ->  (B, 1, S)."""
    S, B, H = encoder_outputs.shape
    assert hidden.shape == (1, B, H)

    in_itemsize = jnp.dtype(encoder_outputs.dtype).itemsize
    out_dtype = hidden.dtype
    out_itemsize = jnp.dtype(out_dtype).itemsize

    tb, B_pad, vmem_limit = _plan_batch_tiling(B, S, H, in_itemsize, out_itemsize)

    if B_pad != B:
        pad = B_pad - B
        hidden = jnp.pad(hidden, ((0, 0), (0, pad), (0, 0)))
        encoder_outputs = jnp.pad(encoder_outputs, ((0, 0), (0, pad), (0, 0)))

    grid_steps = B_pad // tb
    h_chunk = _h_chunk(H)

    out_bs = pl.pallas_call(
        _make_attn_dot_kernel(tb, H, h_chunk, single_step=(grid_steps == 1)),
        out_shape=jax.ShapeDtypeStruct((B_pad, S), out_dtype),
        grid_spec=pltpu.PrefetchScalarGridSpec(
            num_scalar_prefetch=0,
            grid=(grid_steps,),
            in_specs=[
                # hidden is small: keep the whole (1, B_pad, H) slab resident
                # (constant block index -> DMA'd once, no per-step re-fetch)
                pl.BlockSpec((1, B_pad, H), lambda b: (0, 0, 0)),
                # encoder outputs stay in native (S, B, H) layout; tb is chosen
                # so this block is either the whole contiguous slab (tb == B)
                # or sublane-aligned tiles with >= ~4 KiB per-s DMA chunks
                pl.BlockSpec((S, tb, H), lambda b: (0, b, 0)),
            ],
            out_specs=pl.BlockSpec((tb, S), lambda b: (b, 0)),
        ),
        compiler_params=pltpu.CompilerParams(
            dimension_semantics=("parallel",),
            vmem_limit_bytes=vmem_limit),
    )(hidden, encoder_outputs)

    # drop batch padding; free reshape to the PyTorch (B, 1, S) result layout
    return out_bs[:B, None, :]


def attn_dot_ref(hidden, encoder_outputs):
    # pure-JAX reference mirroring the PyTorch code path
    scores = jnp.sum(hidden * encoder_outputs, axis=2)   # (S, B)
    scores = scores.T                                    # (B, S)
    return jax.nn.softmax(scores, axis=1)[:, None, :]    # (B, 1, S)


if __name__ == "__main__":
    # small shapes: batch=2, seq=8, hidden=32
    B, S, H = 2, 8, 32
    key = jax.random.PRNGKey(0)
    k1, k2 = jax.random.split(key)
    hidden = jax.random.normal(k1, (1, B, H), dtype=jnp.float32)
    encoder_outputs = jax.random.normal(k2, (S, B, H), dtype=jnp.float32)

    out = attn_dot(hidden, encoder_outputs)
    out = jax.block_until_ready(out)

    ref = attn_dot_ref(hidden, encoder_outputs)
    assert out.shape == (B, 1, S), out.shape
    assert jnp.allclose(out, ref, atol=1e-5, rtol=1e-5), "mismatch vs reference"
    assert jnp.allclose(jnp.sum(out, axis=-1), 1.0, atol=1e-5), "rows must sum to 1"
    # TODO(synk): 'general' and 'concat' scoring branches are not exercised by
    # the default forward (method='dot'); only the dot path is kernelized.
    print("KERNEL_OK")
</pallas_src>

<mosaic_0001>
module attributes {stable_mosaic.version = 11 : i64} {
  func.func @kernel(%arg0: i32, %arg1: memref<1x2x32xf32, #tpu.memory_space<vmem>>, %arg2: memref<8x2x32xf32, #tpu.memory_space<vmem>>, %arg3: memref<2x8xf32, #tpu.memory_space<vmem>>) attributes {dimension_semantics = [#tpu.dimension_semantics<parallel>], iteration_bounds = array<i64: 1>, scalar_prefetch = 0 : i64, scratch_operands = 0 : i64, tpu.core_type = #tpu.core_type<tc>, window_params = [{pipeline_mode = #tpu.pipeline_mode<synchronous>, transform_indices = @transform_0, window_bounds = array<i64: 1, 2, 32>}, {transform_indices = @transform_1, window_bounds = array<i64: 8, 2, 32>}, {transform_indices = @transform_2, window_bounds = array<i64: 2, 8>}]} {
    %c0 = arith.constant 0 : index
    %c0_0 = arith.constant 0 : index
    %c0_1 = arith.constant 0 : index
    %0 = vector.load %arg1[%c0, %c0_0, %c0_1] : memref<1x2x32xf32, #tpu.memory_space<vmem>>, vector<1x2x32xf32>
    %cst = arith.constant 0.000000e+00 : f32
    %1 = vector.broadcast %cst : f32 to vector<8x2xf32>
    %c0_2 = arith.constant 0 : index
    %c0_3 = arith.constant 0 : index
    %c0_4 = arith.constant 0 : index
    %2 = vector.load %arg2[%c0_2, %c0_3, %c0_4] : memref<8x2x32xf32, #tpu.memory_space<vmem>>, vector<8x2x32xf32>
    %3 = vector.broadcast %0 : vector<1x2x32xf32> to vector<8x2x32xf32>
    %4 = arith.mulf %3, %2 : vector<8x2x32xf32>
    %cst_5 = arith.constant dense<0.000000e+00> : vector<8x2xf32>
    %5 = vector.multi_reduction <add>, %4, %cst_5 [2] : vector<8x2x32xf32> to vector<8x2xf32>
    %6 = arith.addf %1, %5 : vector<8x2xf32>
    %7 = tpu.transpose %6, [1, 0] : vector<8x2xf32> -> vector<2x8xf32>
    %cst_6 = arith.constant dense<0xFF800000> : vector<2xf32>
    %8 = vector.multi_reduction <maximumf>, %7, %cst_6 [1] : vector<2x8xf32> to vector<2xf32>
    %9 = vector.shape_cast %8 : vector<2xf32> to vector<2x1xf32>
    %10 = vector.broadcast %9 : vector<2x1xf32> to vector<2x8xf32>
    %11 = arith.subf %7, %10 : vector<2x8xf32>
    %12 = math.exp %11 : vector<2x8xf32>
    %cst_7 = arith.constant dense<0.000000e+00> : vector<2xf32>
    %13 = vector.multi_reduction <add>, %12, %cst_7 [1] : vector<2x8xf32> to vector<2xf32>
    %14 = vector.shape_cast %13 : vector<2xf32> to vector<2x1xf32>
    %15 = vector.broadcast %14 : vector<2x1xf32> to vector<2x8xf32>
    %16 = arith.divf %12, %15 : vector<2x8xf32>
    %c0_8 = arith.constant 0 : index
    %c0_9 = arith.constant 0 : index
    %17 = vector.load %arg3[%c0_8, %c0_9] : memref<2x8xf32, #tpu.memory_space<vmem>>, vector<2x8xf32>
    tpu.vector_store %arg3[%c0_8, %c0_9], %16 {strides = array<i32>} : memref<2x8xf32, #tpu.memory_space<vmem>>, vector<2x8xf32>,
    return
  }
  func.func @transform_0(%arg0: i32) -> (i32, i32, i32) {
    %c0_i32 = arith.constant 0 : i32
    %c0_i32_0 = arith.constant 0 : i32
    %c0_i32_1 = arith.constant 0 : i32
    %c0_i32_2 = arith.constant 0 : i32
    return %c0_i32, %c0_i32_0, %c0_i32_1 : i32, i32, i32
  }
  func.func @transform_1(%arg0: i32) -> (i32, i32, i32) {
    %c0_i32 = arith.constant 0 : i32
    %c0_i32_0 = arith.constant 0 : i32
    %c0_i32_1 = arith.constant 0 : i32
    return %c0_i32, %arg0, %c0_i32_0 : i32, i32, i32
  }
  func.func @transform_2(%arg0: i32) -> (i32, i32) {
    %c0_i32 = arith.constant 0 : i32
    %c0_i32_0 = arith.constant 0 : i32
    return %arg0, %c0_i32 : i32, i32
  }
}

</mosaic_0001>

<bundles_post_ra>
// kernel: tpu_custom_call.1
= control target key start
LH: loop header
LB: loop body
LE: loop exit
PB: predicated region body
PF: predicated region fallthrough
CT: control target
= control target key end

     0   :  { %7 = vsyncpa [#allocation3], 0  ;;  %s362_s0 = inlined_call_operand.hbm [shape: f32[1,2,32], index: 0, kind: input, shape index: {}]   ;;  %s363_s1 = inlined_call_operand.hbm [shape: f32[8,2,32], index: 1, kind: input, shape index: {}]   ;;  %s364_s2 = inlined_call_operand.hbm [shape: f32[2,8], index: 2, kind: output, shape index: {}]  }
   0x1   :  { %8 = vsyncpa [#allocation6], 0 }
   0x2   :  { %9 = vsyncpa [#allocation4], 0  ;;  %s288_s9 = smov [#allocation2]   ;;  %s289_s11 = smov [#allocation5]  }
   0x3   :  { %s16_s10 = sshll.u32 %s288_s9, 4  ;;  %s25_s12 = sshll.u32 %s289_s11, 4  ;;  %s17_s10 = int_to_ptr.vmem [resolvable:$true] %s16_s10  ;;  %s308_s12 = int_to_ptr.vmem [resolvable:$true] %s25_s12 }
   0x4   :  { %s216_s15 = scalar_lea.hbm %s362_s0, 32 }
   0x5   :  { %p217_p0 = scmp.ne.s32.totalorder %s362_s0, %s216_s15  ;;  %p220_p1 = scmp.lt.u32.totalorder %s216_s15, %s362_s0 }
   0x7   :  { %p222_p2 = pnand %p220_p1, %p217_p0 }
   0x9   :  { %225 = shalt.err (!%p222_p2)
}
   0xa   :  { %s226_s20 = scalar_lea.vmem %s17_s10, 32  ;;  %p231_p4 = scmp.lt.s32.totalorder %s17_s10, %s17_s10 }
   0xb   :  { %p227_p3 = scmp.ne.s32.totalorder %s17_s10, %s226_s20  ;;  %p232_p5 = scmp.lt.s32.totalorder %s226_s20, %s226_s20 }
   0xd   :  { %p233_p6 = por %p232_p5, %p231_p4 }
   0xf   :  { %p234_p7 = pnand %p233_p6, %p227_p3 }
  0x11   :  { %237 = shalt.err (!%p234_p7)
}
  0x12   :  { %19 = dma.hbm_to_vmem [thread:$0]  %s362_s0, 32, %s17_s10, [#allocation3]  }
  0x13   :  { %s238_s25 = scalar_lea.hbm %s363_s1, 256 }
  0x14   :  { %p239_p8 = scmp.ne.s32.totalorder %s363_s1, %s238_s25  ;;  %p242_p9 = scmp.lt.u32.totalorder %s238_s25, %s363_s1 }
  0x16   :  { %p244_p10 = pnand %p242_p9, %p239_p8 }
  0x18   :  { %247 = shalt.err (!%p244_p10)
}
  0x19   :  { %s248_s30 = scalar_lea.vmem %s308_s12, 256  ;;  %p253_p12 = scmp.lt.s32.totalorder %s308_s12, %s308_s12 }
  0x1a   :  { %p249_p11 = scmp.ne.s32.totalorder %s308_s12, %s248_s30  ;;  %p254_p13 = scmp.lt.s32.totalorder %s248_s30, %s248_s30 }
  0x1c   :  { %p255_p0 = por %p254_p13, %p253_p12 }
  0x1e   :  { %p256_p1 = pnand %p255_p0, %p249_p11 }
  0x20   :  { %259 = shalt.err (!%p256_p1)
}
  0x21   :  { %s290_s0 = smov 32   ;;  %s291_s3 = smov 2  }
  0x22   :  { %31 = dma.hbm_to_vmem [thread:$0]  %s363_s1, 256, %s308_s12, [#allocation6], %s290_s0, %s290_s0, %s291_s3  }
  0x23   :  { %282 = dma.done.wait [#allocation3], 32  }
  0x24   :  { %283 = vsyncadd [#allocation3], 4294967264 }
  0x25   :  { %284 = dma.done.wait [#allocation6], 256  }
  0x26   :  { %285 = vsyncadd [#allocation6], 4294967040  ;;  %vm55_vm0 = vcmask 254976   ;;  %v38_v0 = vld [vmem:[#allocation2] sm:$0x3]  ;;  %v96_v25 = vlaneseq  ;;  %vm130_vm1 = vcmask 1041409  }
  0x27   :  { %v39_v1 = vld [vmem:[#allocation5] sm:$0x3]  ;;  %v41_v2 = vld [vmem:[#allocation5 + $0x4] sm:$0x3]  ;;  %v40_v5 = vld [vmem:[#allocation5 + $0x2] sm:$0x3] }
  0x28   :  { %v47_v3 = vmul.f32 %v39_v1, %v38_v0  ;;  %v49_v4 = vmul.f32 %v41_v2, %v38_v0  ;;  %v42_v6 = vld [vmem:[#allocation5 + $0x6] sm:$0x3]  ;;  %v48_v7 = vmul.f32 %v40_v5, %v38_v0  ;;  %v43_v9 = vld [vmem:[#allocation5 + $0x8] sm:$0x3]  ;;  %v44_v10 = vld [vmem:[#allocation5 + $0xa] sm:$0x3] }
  0x29   :  { %v50_v8 = vmul.f32 %v42_v6, %v38_v0  ;;  %v51_v15 = vmul.f32 %v43_v9, %v38_v0  ;;  %v52_v16 = vmul.f32 %v44_v10, %v38_v0  ;;  %v45_v17 = vld [vmem:[#allocation5 + $0xc] sm:$0x3]  ;;  %v46_v18 = vld [vmem:[#allocation5 + $0xe] sm:$0x3]  ;;  %v97_v26 = vand.u32 127, %v96_v25  ;;  %s292_s1 = smov [#allocation7]  }
  0x2a   :  { %v56_v11 = vsel %vm55_vm0, %v47_v3, 0.0  ;;  %v62_v12 = vsel %vm55_vm0, %v49_v4, 0.0  ;;  %v59_v13 = vsel %vm55_vm0, %v48_v7, 0.0  ;;  %v53_v21 = vmul.f32 %v45_v17, %v38_v0  ;;  %s196_s6 = sshll.u32 %s292_s1, 4  ;;  %s197_s6 = int_to_ptr.vmem [resolvable:$true] %s196_s6 }
  0x2b   :  { %57 = vadd.xlane.f32.xlu0 %v56_v11  ;;  %63 = vadd.xlane.f32.xlu1 %v62_v12  ;;  %v65_v14 = vsel %vm55_vm0, %v50_v8, 0.0  ;;  %v68_v19 = vsel %vm55_vm0, %v51_v15, 0.0  ;;  %v71_v20 = vsel %vm55_vm0, %v52_v16, 0.0  ;;  %v54_v22 = vmul.f32 %v46_v18, %v38_v0  ;;  %s260_s7 = scalar_lea.vmem %s197_s6, 32  ;;  %p265_p3 = scmp.lt.s32.totalorder %s197_s6, %s197_s6 }
  0x2c   :  { %v74_v23 = vsel %vm55_vm0, %v53_v21, 0.0  ;;  %v99_v27 = vshrl.u32 %v96_v25, 7  ;;  %vm132_vm2 = vcmask 1042434   ;;  %vm134_vm3 = vcmask 1043459   ;;  %p261_p2 = scmp.ne.s32.totalorder %s197_s6, %s260_s7  ;;  %p266_p4 = scmp.lt.s32.totalorder %s260_s7, %s260_s7 }
  0x2d   :  { %v77_v24 = vsel %vm55_vm0, %v54_v22, 0.0  ;;  %vm136_vm4 = vcmask 1044484   ;;  %vm138_vm5 = vcmask 1045509   ;;  %vm140_vm6 = vcmask 1046534  }
  0x2e   :  { %v100_v30 = vsub.s32 %v97_v26, %v99_v27  ;;  %vm142_vm7 = vcmask 1047559   ;;  %vm177_vm8 = vcmask 58368   ;;  %p267_p5 = por %p266_p4, %p265_p3 }
  0x2f   :  { %60 = vadd.xlane.f32.xlu0 %v59_v13  ;;  %66 = vadd.xlane.f32.xlu1 %v65_v14 }
  0x30   :  { %p268_p6 = pnand %p267_p5, %p261_p2 }
  0x33   :  { %69 = vadd.xlane.f32.xlu0 %v68_v19  ;;  %72 = vadd.xlane.f32.xlu1 %v71_v20 }
  0x37   :  { %75 = vadd.xlane.f32.xlu0 %v74_v23  ;;  %78 = vadd.xlane.f32.xlu1 %v77_v24 }
  0xb8   :  { %v58_v28 = vpop.xlane.xlu0 %57  ;;  %v64_v29 = vpop.xlane.xlu1 %63 }
  0xb9   :  { %v101_v33 = vrot.slane %v58_v28, %v100_v30  ;;  %v109_v36 = vrot.slane %v64_v29, %v100_v30 }
  0xbc   :  { %v61_v31 = vpop.xlane.xlu0 %60  ;;  %v67_v32 = vpop.xlane.xlu1 %66 }
  0xbd   :  { %v105_v34 = vrot.slane %v61_v31, %v100_v30  ;;  %v113_v35 = vrot.slane %v67_v32, %v100_v30 }
  0xbf   :  { %v131_v37 = vsel %vm130_vm1, %v105_v34, %v101_v33 }
  0xc0   :  { %v133_v38 = vsel %vm132_vm2, %v109_v36, %v131_v37  ;;  %v70_v39 = vpop.xlane.xlu0 %69  ;;  %v73_v40 = vpop.xlane.xlu1 %72 }
  0xc1   :  { %v135_v41 = vsel %vm134_vm3, %v113_v35, %v133_v38  ;;  %v117_v42 = vrot.slane %v70_v39, %v100_v30  ;;  %v121_v43 = vrot.slane %v73_v40, %v100_v30 }
  0xc3   :  { %v137_v44 = vsel %vm136_vm4, %v117_v42, %v135_v41 }
  0xc4   :  { %v76_v45 = vpop.xlane.xlu0 %75  ;;  %v79_v46 = vpop.xlane.xlu1 %78  ;;  %v139_v49 = vsel %vm138_vm5, %v121_v43, %v137_v44 }
  0xc5   :  { %v125_v47 = vrot.slane %v76_v45, %v100_v30  ;;  %v129_v48 = vrot.slane %v79_v46, %v100_v30 }
  0xc7   :  { %v141_v50 = vsel %vm140_vm6, %v125_v47, %v139_v49 }
  0xc8   :  { %v143_v51 = vsel %vm142_vm7, %v129_v48, %v141_v50 }
  0xc9   :  { %145 = vxpose.xlu0.b32.start.end [1/1] (short) (narrow) %v143_v51, 8 }
 0x149   :  { %v161_v52 = vpop.trf.xlu0 }
 0x14a   :  { %v178_v53 = vsel %vm177_vm8, %v161_v52, -inf }
 0x14b   :  { %179 = vmax.xlane.f32.xlu1 %v178_v53 }
 0x1d8   :  { %v180_v54 = vpop.xlane.xlu1 %179 }
 0x1d9   :  { %v181_v55 = vsub.f32 %v161_v52, %v180_v54 }
 0x1db   :  { %v182_v56 = vmul.f32 1.442695, %v181_v55 }
 0x1dd   :  { %212 = vpow2.f32 %v182_v56 }
 0x1e7   :  { %v213_v57 = vpop.eup %212 }
 0x1e8   :  { %v184_v58 = vsel %vm177_vm8, %v213_v57, 0.0 }
 0x1e9   :  { %185 = vadd.xlane.f32.xlu1 %v184_v58 }
 0x276   :  { %v186_v59 = vpop.xlane.xlu1 %185 }
 0x277   :  { %214 = vrcp.f32 %v186_v59 }
 0x281   :  { %v215_v60 = vpop.eup %214 }
 0x282   :  { %v188_v61 = vmul.f32 %v215_v60, %v213_v57 }
 0x284   :  { %189 = vst.msk [vmem:[#allocation7] sm:$0x3] %vm177_vm8, %v188_v61 }
 0x285   :  { %271 = shalt.err (!%p268_p6)
}
 0x286   :  { %s272_s10 = scalar_lea.hbm %s364_s2, 32 }
 0x287   :  { %p273_p7 = scmp.ne.s32.totalorder %s364_s2, %s272_s10  ;;  %p276_p8 = scmp.lt.u32.totalorder %s272_s10, %s364_s2 }
 0x289   :  { %p278_p9 = pnand %p276_p8, %p273_p7 }
 0x28b   :  { %281 = shalt.err (!%p278_p9)
}
 0x28c   :  { %199 = dma.vmem_to_hbm [thread:$0]  %s197_s6, 32, %s364_s2, [#allocation4]  }
 0x28d   :  { %286 = dma.done.wait [#allocation4], 32  }
 0x28e   :  { %287 = vsyncadd [#allocation4], 4294967264 }
 0x28f   :  { %203 = vsyncpa [#allocation3], 1 }
 0x290   :  { %204 = vsyncpa [#allocation6], 1 }
 0x291   :  { %205 = vsyncpa [#allocation4], 1 }

</bundles_post_ra>
